<compile_context>
chip_gen: v7x
topology: tpu7x:2x2x1
jax: 0.10.0
libtpu: 0.0.40
codegen_flags: <defaults>
</compile_context>

<pallas_src>
import math
import functools

import jax
import jax.numpy as jnp
from jax.experimental import pallas as pl
from jax.experimental.pallas import tpu as pltpu


def _ca2_kernel(x_ref, y_ref,
                wxq_ref, bxq_ref,
                wyq_ref, byq_ref,
                wkv_ref, bkv_ref,
                out_ref,
                *, feature_dim):
    """One grid step = TB batch elements.  All tiles live in VMEM."""
    TB, N, D = x_ref.shape
    M = TB * N

    x = x_ref[...]                                   # (TB, N, D), input dtype
    y = y_ref[...]

    # Flatten batch into M for the token-wise projections (better MXU fill).
    x2 = x.reshape(M, D).astype(jnp.bfloat16)
    y2 = y.reshape(M, D).astype(jnp.bfloat16)

    # Q1 = X @ W_xq + b_xq ; Q2 = Y @ W_yq + b_yq     (bf16 MXU, f32 acc)
    q1 = jnp.dot(x2, wxq_ref[...], preferred_element_type=jnp.float32) + bxq_ref[...]
    q2 = jnp.dot(y2, wyq_ref[...], preferred_element_type=jnp.float32) + byq_ref[...]

    # Fused K_f / V_f: cat(Q1, Q2) @ [W_fk | W_fv]  ->  one (M,2D)x(2D,2D) matmul.
    qcat = jnp.concatenate([q1, q2], axis=-1).astype(jnp.bfloat16)       # (M, 2D)
    kv = jnp.dot(qcat, wkv_ref[...], preferred_element_type=jnp.float32) + bkv_ref[...]
    kf = kv[:, :D].reshape(TB, N, D).astype(jnp.bfloat16)                # (TB, N, D)
    vf = kv[:, D:].reshape(TB, N, D).astype(jnp.bfloat16)                # (TB, N, D)

    # Stack q1 || q2 along the query axis: one score matmul + one softmax + one PV.
    q_stack = jnp.concatenate(
        [q1.reshape(TB, N, D), q2.reshape(TB, N, D)], axis=1
    ).astype(jnp.bfloat16)                                               # (TB, 2N, D)

    scale = 1.0 / math.sqrt(feature_dim)
    # Contract on the trailing feature dims -> no explicit kf.T materialization.
    s = jnp.einsum("bqd,bkd->bqk", q_stack, kf,
                   preferred_element_type=jnp.float32) * scale           # (TB, 2N, N)

    # Softmax in f32 (max-shifted); reciprocal on the EUP.
    m = jnp.max(s, axis=-1, keepdims=True)
    e = jnp.exp(s - m)
    denom = jnp.sum(e, axis=-1, keepdims=True)
    p = e * pl.reciprocal(denom, approx=True)

    a = jnp.einsum("bqk,bkd->bqd", p.astype(jnp.bfloat16), vf,
                   preferred_element_type=jnp.float32)                   # (TB, 2N, D)
    a1 = a[:, :N, :]
    a2 = a[:, N:, :]

    out_ref[...] = (x + a1 + y + a2).astype(out_ref.dtype)


def _pick_batch_tile(B, cap=8):
    """Largest divisor of B not exceeding `cap`."""
    for tb in range(min(B, cap), 0, -1):
        if B % tb == 0:
            return tb
    return 1


def ca2_forward(X, Y, params, *, feature_dim):
    """params: dict of PyTorch-convention weights (out, in) and biases (out,)."""
    B, N, D = X.shape
    assert D == feature_dim

    # Pre-transpose to (in, out), cast matmul weights to bf16 once, and fuse
    # W_fk / W_fv into a single (2D, 2D) projection.  Biases stay f32 (added
    # to the f32 accumulators inside the kernel).
    wxq = params["W_xq_w"].T.astype(jnp.bfloat16)                        # (D, D)
    wyq = params["W_yq_w"].T.astype(jnp.bfloat16)                        # (D, D)
    wkv = jnp.concatenate(
        [params["W_fk_w"].T, params["W_fv_w"].T], axis=1
    ).astype(jnp.bfloat16)                                               # (2D, 2D)
    bxq = params["W_xq_b"].reshape(1, D).astype(jnp.float32)
    byq = params["W_yq_b"].reshape(1, D).astype(jnp.float32)
    bkv = jnp.concatenate(
        [params["W_fk_b"], params["W_fv_b"]]
    ).reshape(1, 2 * D).astype(jnp.float32)

    TB = _pick_batch_tile(B)

    seq_spec = pl.BlockSpec((TB, N, D), lambda b: (b, 0, 0))
    w_spec = pl.BlockSpec((D, D), lambda b: (0, 0))
    wkv_spec = pl.BlockSpec((2 * D, 2 * D), lambda b: (0, 0))
    b_spec = pl.BlockSpec((1, D), lambda b: (0, 0))
    bkv_spec = pl.BlockSpec((1, 2 * D), lambda b: (0, 0))

    kernel = functools.partial(_ca2_kernel, feature_dim=feature_dim)

    return pl.pallas_call(
        kernel,
        out_shape=jax.ShapeDtypeStruct((B, N, D), X.dtype),
        grid_spec=pl.GridSpec(
            grid=(B // TB,),
            in_specs=[
                seq_spec, seq_spec,       # X, Y
                w_spec, b_spec,           # W_xq, b_xq
                w_spec, b_spec,           # W_yq, b_yq
                wkv_spec, bkv_spec,       # W_kv (= [W_fk | W_fv]), b_kv
            ],
            out_specs=seq_spec,
        ),
        compiler_params=pltpu.CompilerParams(
            dimension_semantics=("parallel",),
            vmem_limit_bytes=48 * 1024 * 1024,
        ),
    )(X, Y, wxq, bxq, wyq, byq, wkv, bkv)


def _reference(X, Y, params, feature_dim):
    """Pure-JAX reference mirroring the PyTorch forward (dropout = eval)."""
    def linear(x, w, b):
        return x @ w.T + b
    Q1 = linear(X, params["W_xq_w"], params["W_xq_b"])
    Q2 = linear(Y, params["W_yq_w"], params["W_yq_b"])
    Qcat = jnp.concatenate([Q1, Q2], axis=-1)
    Kf = linear(Qcat, params["W_fk_w"], params["W_fk_b"])
    Vf = linear(Qcat, params["W_fv_w"], params["W_fv_b"])
    scale = feature_dim ** 0.5
    A1 = jax.nn.softmax(jnp.einsum("bnd,bmd->bnm", Q1, Kf) / scale, axis=-1) @ Vf
    A2 = jax.nn.softmax(jnp.einsum("bnd,bmd->bnm", Q2, Kf) / scale, axis=-1) @ Vf
    return (X + A1) + (Y + A2)


if __name__ == "__main__":
    feature_dim = 32   # small synthetic size (module default is 256)
    B, N = 2, 8

    key = jax.random.PRNGKey(0)
    keys = jax.random.split(key, 12)

    # Deterministic parameter init (PyTorch-style uniform bounds).
    def init_w(k, out_f, in_f):
        bound = 1.0 / math.sqrt(in_f)
        return jax.random.uniform(k, (out_f, in_f), jnp.float32, -bound, bound)

    def init_b(k, out_f, in_f):
        bound = 1.0 / math.sqrt(in_f)
        return jax.random.uniform(k, (out_f,), jnp.float32, -bound, bound)

    params = {
        "W_xq_w": init_w(keys[0], feature_dim, feature_dim),
        "W_xq_b": init_b(keys[1], feature_dim, feature_dim),
        "W_yq_w": init_w(keys[2], feature_dim, feature_dim),
        "W_yq_b": init_b(keys[3], feature_dim, feature_dim),
        "W_fk_w": init_w(keys[4], feature_dim, 2 * feature_dim),
        "W_fk_b": init_b(keys[5], feature_dim, 2 * feature_dim),
        "W_fv_w": init_w(keys[6], feature_dim, 2 * feature_dim),
        "W_fv_b": init_b(keys[7], feature_dim, 2 * feature_dim),
    }

    X = jax.random.normal(keys[8], (B, N, feature_dim), jnp.float32)
    Y = jax.random.normal(keys[9], (B, N, feature_dim), jnp.float32)

    out = ca2_forward(X, Y, params, feature_dim=feature_dim)
    out = jax.block_until_ready(out)

    ref = _reference(X, Y, params, feature_dim)
    assert out.shape == (B, N, feature_dim)
    # bf16 MXU operands (f32 accumulate) -> relaxed tolerance vs. f32 reference.
    assert jnp.allclose(out, ref, atol=5e-2, rtol=5e-2), "mismatch vs reference"

    print("KERNEL_OK")
</pallas_src>

<mosaic_0001>
module attributes {stable_mosaic.version = 11 : i64} {
  func.func @_ca2_kernel(%arg0: i32, %arg1: memref<2x8x32xf32, #tpu.memory_space<vmem>>, %arg2: memref<2x8x32xf32, #tpu.memory_space<vmem>>, %arg3: memref<32x32xbf16, #tpu.memory_space<vmem>>, %arg4: memref<1x32xf32, #tpu.memory_space<vmem>>, %arg5: memref<32x32xbf16, #tpu.memory_space<vmem>>, %arg6: memref<1x32xf32, #tpu.memory_space<vmem>>, %arg7: memref<64x64xbf16, #tpu.memory_space<vmem>>, %arg8: memref<1x64xf32, #tpu.memory_space<vmem>>, %arg9: memref<2x8x32xf32, #tpu.memory_space<vmem>>) attributes {dimension_semantics = [#tpu.dimension_semantics<parallel>], iteration_bounds = array<i64: 1>, scalar_prefetch = 0 : i64, scratch_operands = 0 : i64, tpu.core_type = #tpu.core_type<tc>, window_params = [{transform_indices = @transform_0, window_bounds = array<i64: 2, 8, 32>}, {transform_indices = @transform_1, window_bounds = array<i64: 2, 8, 32>}, {pipeline_mode = #tpu.pipeline_mode<synchronous>, transform_indices = @transform_2, window_bounds = array<i64: 32, 32>}, {pipeline_mode = #tpu.pipeline_mode<synchronous>, transform_indices = @transform_3, window_bounds = array<i64: 1, 32>}, {pipeline_mode = #tpu.pipeline_mode<synchronous>, transform_indices = @transform_4, window_bounds = array<i64: 32, 32>}, {pipeline_mode = #tpu.pipeline_mode<synchronous>, transform_indices = @transform_5, window_bounds = array<i64: 1, 32>}, {pipeline_mode = #tpu.pipeline_mode<synchronous>, transform_indices = @transform_6, window_bounds = array<i64: 64, 64>}, {pipeline_mode = #tpu.pipeline_mode<synchronous>, transform_indices = @transform_7, window_bounds = array<i64: 1, 64>}, {transform_indices = @transform_8, window_bounds = array<i64: 2, 8, 32>}]} {
    %c0 = arith.constant 0 : index
    %c0_0 = arith.constant 0 : index
    %c0_1 = arith.constant 0 : index
    %0 = vector.load %arg1[%c0, %c0_0, %c0_1] : memref<2x8x32xf32, #tpu.memory_space<vmem>>, vector<2x8x32xf32>
    %c0_2 = arith.constant 0 : index
    %c0_3 = arith.constant 0 : index
    %c0_4 = arith.constant 0 : index
    %1 = vector.load %arg2[%c0_2, %c0_3, %c0_4] : memref<2x8x32xf32, #tpu.memory_space<vmem>>, vector<2x8x32xf32>
    %2 = vector.shape_cast %0 : vector<2x8x32xf32> to vector<16x32xf32>
    %3 = arith.truncf %2 : vector<16x32xf32> to vector<16x32xbf16>
    %4 = vector.shape_cast %1 : vector<2x8x32xf32> to vector<16x32xf32>
    %5 = arith.truncf %4 : vector<16x32xf32> to vector<16x32xbf16>
    %c0_5 = arith.constant 0 : index
    %c0_6 = arith.constant 0 : index
    %6 = vector.load %arg3[%c0_5, %c0_6] : memref<32x32xbf16, #tpu.memory_space<vmem>>, vector<32x32xbf16>
    %cst = arith.constant dense<0.000000e+00> : vector<16x32xf32>
    %7 = tpu.matmul %3, %6, %cst {dimension_numbers = #tpu.dot_dimension_numbers<[1], [0], [0], [1], [0, 0, 1, 1], [], []>} : vector<16x32xbf16>, vector<32x32xbf16>, vector<16x32xf32> -> vector<16x32xf32>
    %c0_7 = arith.constant 0 : index
    %c0_8 = arith.constant 0 : index
    %8 = vector.load %arg4[%c0_7, %c0_8] : memref<1x32xf32, #tpu.memory_space<vmem>>, vector<1x32xf32>
    %9 = vector.broadcast %8 : vector<1x32xf32> to vector<16x32xf32>
    %10 = arith.addf %7, %9 : vector<16x32xf32>
    %c0_9 = arith.constant 0 : index
    %c0_10 = arith.constant 0 : index
    %11 = vector.load %arg5[%c0_9, %c0_10] : memref<32x32xbf16, #tpu.memory_space<vmem>>, vector<32x32xbf16>
    %cst_11 = arith.constant dense<0.000000e+00> : vector<16x32xf32>
    %12 = tpu.matmul %5, %11, %cst_11 {dimension_numbers = #tpu.dot_dimension_numbers<[1], [0], [0], [1], [0, 0, 1, 1], [], []>} : vector<16x32xbf16>, vector<32x32xbf16>, vector<16x32xf32> -> vector<16x32xf32>
    %c0_12 = arith.constant 0 : index
    %c0_13 = arith.constant 0 : index
    %13 = vector.load %arg6[%c0_12, %c0_13] : memref<1x32xf32, #tpu.memory_space<vmem>>, vector<1x32xf32>
    %14 = vector.broadcast %13 : vector<1x32xf32> to vector<16x32xf32>
    %15 = arith.addf %12, %14 : vector<16x32xf32>
    %16 = tpu.concatenate %10, %15 in 1 : vector<16x32xf32>, vector<16x32xf32> -> vector<16x64xf32>
    %17 = arith.truncf %16 : vector<16x64xf32> to vector<16x64xbf16>
    %c0_14 = arith.constant 0 : index
    %c0_15 = arith.constant 0 : index
    %18 = vector.load %arg7[%c0_14, %c0_15] : memref<64x64xbf16, #tpu.memory_space<vmem>>, vector<64x64xbf16>
    %cst_16 = arith.constant dense<0.000000e+00> : vector<16x64xf32>
    %19 = tpu.matmul %17, %18, %cst_16 {dimension_numbers = #tpu.dot_dimension_numbers<[1], [0], [0], [1], [0, 0, 1, 1], [], []>} : vector<16x64xbf16>, vector<64x64xbf16>, vector<16x64xf32> -> vector<16x64xf32>
    %c0_17 = arith.constant 0 : index
    %c0_18 = arith.constant 0 : index
    %20 = vector.load %arg8[%c0_17, %c0_18] : memref<1x64xf32, #tpu.memory_space<vmem>>, vector<1x64xf32>
    %21 = vector.broadcast %20 : vector<1x64xf32> to vector<16x64xf32>
    %22 = arith.addf %19, %21 : vector<16x64xf32>
    %23 = vector.extract_strided_slice %22 {offsets = [0, 0], sizes = [16, 32], strides = [1, 1]} : vector<16x64xf32> to vector<16x32xf32>
    %24 = vector.shape_cast %23 : vector<16x32xf32> to vector<2x8x32xf32>
    %25 = arith.truncf %24 : vector<2x8x32xf32> to vector<2x8x32xbf16>
    %26 = vector.extract_strided_slice %22 {offsets = [0, 32], sizes = [16, 32], strides = [1, 1]} : vector<16x64xf32> to vector<16x32xf32>
    %27 = vector.shape_cast %26 : vector<16x32xf32> to vector<2x8x32xf32>
    %28 = arith.truncf %27 : vector<2x8x32xf32> to vector<2x8x32xbf16>
    %29 = vector.shape_cast %10 : vector<16x32xf32> to vector<2x8x32xf32>
    %30 = vector.shape_cast %15 : vector<16x32xf32> to vector<2x8x32xf32>
    %31 = tpu.concatenate %29, %30 in 1 : vector<2x8x32xf32>, vector<2x8x32xf32> -> vector<2x16x32xf32>
    %32 = arith.truncf %31 : vector<2x16x32xf32> to vector<2x16x32xbf16>
    "tpu.trace_start"() <{level = 10 : i32, message = "bqd,bkd->bqk"}> : () -> ()
    %cst_19 = arith.constant dense<0.000000e+00> : vector<2x16x8xf32>
    %33 = tpu.matmul %32, %25, %cst_19 {dimension_numbers = #tpu.dot_dimension_numbers<[2], [2], [1], [1], [0, 0, 0, 1, 1, 1], [0], [0]>} : vector<2x16x32xbf16>, vector<2x8x32xbf16>, vector<2x16x8xf32> -> vector<2x16x8xf32>
    "tpu.trace_stop"() : () -> ()
    %cst_20 = arith.constant 0.176776692 : f32
    %34 = vector.broadcast %cst_20 : f32 to vector<2x16x8xf32>
    %35 = arith.mulf %33, %34 : vector<2x16x8xf32>
    %cst_21 = arith.constant dense<0xFF800000> : vector<2x16xf32>
    %36 = vector.multi_reduction <maximumf>, %35, %cst_21 [2] : vector<2x16x8xf32> to vector<2x16xf32>
    %37 = vector.shape_cast %36 : vector<2x16xf32> to vector<2x16x1xf32>
    %38 = vector.broadcast %37 : vector<2x16x1xf32> to vector<2x16x8xf32>
    %39 = arith.subf %35, %38 : vector<2x16x8xf32>
    %40 = math.exp %39 : vector<2x16x8xf32>
    %cst_22 = arith.constant dense<0.000000e+00> : vector<2x16xf32>
    %41 = vector.multi_reduction <add>, %40, %cst_22 [2] : vector<2x16x8xf32> to vector<2x16xf32>
    %42 = vector.shape_cast %41 : vector<2x16xf32> to vector<2x16x1xf32>
    %43 = tpu.reciprocal %42 {approx = true} : vector<2x16x1xf32> -> vector<2x16x1xf32>
    %44 = vector.broadcast %43 : vector<2x16x1xf32> to vector<2x16x8xf32>
    %45 = arith.mulf %40, %44 : vector<2x16x8xf32>
    %46 = arith.truncf %45 : vector<2x16x8xf32> to vector<2x16x8xbf16>
    "tpu.trace_start"() <{level = 10 : i32, message = "bqk,bkd->bqd"}> : () -> ()
    %cst_23 = arith.constant dense<0.000000e+00> : vector<2x16x32xf32>
    %47 = tpu.matmul %46, %28, %cst_23 {dimension_numbers = #tpu.dot_dimension_numbers<[2], [1], [1], [2], [0, 0, 0, 1, 1, 2], [0], [0]>} : vector<2x16x8xbf16>, vector<2x8x32xbf16>, vector<2x16x32xf32> -> vector<2x16x32xf32>
    "tpu.trace_stop"() : () -> ()
    %48 = vector.extract_strided_slice %47 {offsets = [0, 0, 0], sizes = [2, 8, 32], strides = [1, 1, 1]} : vector<2x16x32xf32> to vector<2x8x32xf32>
    %49 = vector.extract_strided_slice %47 {offsets = [0, 8, 0], sizes = [2, 8, 32], strides = [1, 1, 1]} : vector<2x16x32xf32> to vector<2x8x32xf32>
    %50 = arith.addf %0, %48 : vector<2x8x32xf32>
    %51 = arith.addf %50, %1 : vector<2x8x32xf32>
    %52 = arith.addf %51, %49 : vector<2x8x32xf32>
    %c0_24 = arith.constant 0 : index
    %c0_25 = arith.constant 0 : index
    %c0_26 = arith.constant 0 : index
    %53 = vector.load %arg9[%c0_24, %c0_25, %c0_26] : memref<2x8x32xf32, #tpu.memory_space<vmem>>, vector<2x8x32xf32>
    tpu.vector_store %arg9[%c0_24, %c0_25, %c0_26], %52 {strides = array<i32>} : memref<2x8x32xf32, #tpu.memory_space<vmem>>, vector<2x8x32xf32>,
    return
  }
  func.func @transform_0(%arg0: i32) -> (i32, i32, i32) {
    %c0_i32 = arith.constant 0 : i32
    %c0_i32_0 = arith.constant 0 : i32
    %c0_i32_1 = arith.constant 0 : i32
    return %arg0, %c0_i32, %c0_i32_0 : i32, i32, i32
  }
  func.func @transform_1(%arg0: i32) -> (i32, i32, i32) {
    %c0_i32 = arith.constant 0 : i32
    %c0_i32_0 = arith.constant 0 : i32
    %c0_i32_1 = arith.constant 0 : i32
    return %arg0, %c0_i32, %c0_i32_0 : i32, i32, i32
  }
  func.func @transform_2(%arg0: i32) -> (i32, i32) {
    %c0_i32 = arith.constant 0 : i32
    %c0_i32_0 = arith.constant 0 : i32
    %c0_i32_1 = arith.constant 0 : i32
    return %c0_i32, %c0_i32_0 : i32, i32
  }
  func.func @transform_3(%arg0: i32) -> (i32, i32) {
    %c0_i32 = arith.constant 0 : i32
    %c0_i32_0 = arith.constant 0 : i32
    %c0_i32_1 = arith.constant 0 : i32
    return %c0_i32, %c0_i32_0 : i32, i32
  }
  func.func @transform_4(%arg0: i32) -> (i32, i32) {
    %c0_i32 = arith.constant 0 : i32
    %c0_i32_0 = arith.constant 0 : i32
    %c0_i32_1 = arith.constant 0 : i32
    return %c0_i32, %c0_i32_0 : i32, i32
  }
  func.func @transform_5(%arg0: i32) -> (i32, i32) {
    %c0_i32 = arith.constant 0 : i32
    %c0_i32_0 = arith.constant 0 : i32
    %c0_i32_1 = arith.constant 0 : i32
    return %c0_i32, %c0_i32_0 : i32, i32
  }
  func.func @transform_6(%arg0: i32) -> (i32, i32) {
    %c0_i32 = arith.constant 0 : i32
    %c0_i32_0 = arith.constant 0 : i32
    %c0_i32_1 = arith.constant 0 : i32
    return %c0_i32, %c0_i32_0 : i32, i32
  }
  func.func @transform_7(%arg0: i32) -> (i32, i32) {
    %c0_i32 = arith.constant 0 : i32
    %c0_i32_0 = arith.constant 0 : i32
    %c0_i32_1 = arith.constant 0 : i32
    return %c0_i32, %c0_i32_0 : i32, i32
  }
  func.func @transform_8(%arg0: i32) -> (i32, i32, i32) {
    %c0_i32 = arith.constant 0 : i32
    %c0_i32_0 = arith.constant 0 : i32
    %c0_i32_1 = arith.constant 0 : i32
    return %arg0, %c0_i32, %c0_i32_0 : i32, i32, i32
  }
}

</mosaic_0001>

<bundles_post_ra>
// kernel: tpu_custom_call.1
= control target key start
LH: loop header
LB: loop body
LE: loop exit
PB: predicated region body
PF: predicated region fallthrough
CT: control target
= control target key end

     0   :  { %13 = vsyncpa [#allocation3], 0  ;;  %s1112_s0 = inlined_call_operand.hbm [shape: f32[2,8,32], index: 0, kind: input, shape index: {}]   ;;  %s1113_s1 = inlined_call_operand.hbm [shape: f32[2,8,32], index: 1, kind: input, shape index: {}]   ;;  %s1114_s2 = inlined_call_operand.hbm [shape: bf16[32,32], index: 2, kind: input, shape index: {}]   ;;  %s1115_s3 = inlined_call_operand.vmem [shape: f32[1,32], index: 3, kind: input, shape index: {}]   ;;  %s1116_s4 = inlined_call_operand.hbm [shape: bf16[32,32], index: 4, kind: input, shape index: {}]   ;;  %s1117_s5 = inlined_call_operand.vmem [shape: f32[1,32], index: 5, kind: input, shape index: {}]   ;;  %s1118_s6 = inlined_call_operand.hbm [shape: bf16[64,64], index: 6, kind: input, shape index: {}]   ;;  %s1119_s7 = inlined_call_operand.vmem [shape: f32[1,64], index: 7, kind: input, shape index: {}]   ;;  %s1120_s8 = inlined_call_operand.hbm [shape: f32[2,8,32], index: 8, kind: output, shape index: {}]  }
   0x1   :  { %14 = vsyncpa [#allocation6], 0 }
   0x2   :  { %15 = vsyncpa [#allocation9], 0 }
   0x3   :  { %16 = vsyncpa [#allocation4], 0  ;;  %s884_s27 = smov [#allocation5]   ;;  %s744_s9 = scalar_lea.hbm %s1113_s1, 256 }
   0x4   :  { %s34_s28 = sshll.u32 %s884_s27, 4  ;;  %p745_p0 = scmp.ne.s32.totalorder %s1113_s1, %s744_s9  ;;  %s35_s28 = int_to_ptr.vmem [resolvable:$true] %s34_s28 }
   0x5   :  { %p748_p1 = scmp.lt.u32.totalorder %s744_s9, %s1113_s1 }
   0x7   :  { %p750_p2 = pnand %p748_p1, %p745_p0 }
   0x9   :  { %753 = shalt.err (!%p750_p2)
}
   0xa   :  { %s754_s14 = scalar_lea.vmem %s35_s28, 256  ;;  %p759_p4 = scmp.lt.s32.totalorder %s35_s28, %s35_s28 }
   0xb   :  { %p755_p3 = scmp.ne.s32.totalorder %s35_s28, %s754_s14  ;;  %p760_p5 = scmp.lt.s32.totalorder %s754_s14, %s754_s14 }
   0xd   :  { %p761_p6 = por %p760_p5, %p759_p4 }
   0xf   :  { %p762_p7 = pnand %p761_p6, %p755_p3 }
  0x11   :  { %765 = shalt.err (!%p762_p7)
}
  0x12   :  { %s885_s15 = smov 128   ;;  %s886_s16 = smov 8  }
  0x13   :  { %40 = dma.hbm_to_vmem [thread:$0]  %s1113_s1, 256, %s35_s28, [#allocation6], %s885_s15, %s885_s15, %s886_s16  }
  0x14   :  { %s887_s19 = smov [#allocation8]   ;;  %s888_s21 = smov [#allocation2]  }
  0x15   :  { %s60_s20 = sshll.u32 %s887_s19, 4  ;;  %s22_s22 = sshll.u32 %s888_s21, 4  ;;  %s61_s20 = int_to_ptr.vmem [resolvable:$true] %s60_s20  ;;  %s23_s22 = int_to_ptr.vmem [resolvable:$true] %s22_s22 }
  0x16   :  { %s766_s25 = scalar_lea.hbm %s1116_s4, 256 }
  0x17   :  { %p767_p8 = scmp.ne.s32.totalorder %s1116_s4, %s766_s25  ;;  %p770_p9 = scmp.lt.u32.totalorder %s766_s25, %s1116_s4 }
  0x19   :  { %p772_p10 = pnand %p770_p9, %p767_p8 }
  0x1b   :  { %775 = shalt.err (!%p772_p10)
}
  0x1c   :  { %s776_s1 = scalar_lea.vmem %s61_s20, 256  ;;  %p781_p12 = scmp.lt.s32.totalorder %s61_s20, %s61_s20 }
  0x1d   :  { %p777_p11 = scmp.ne.s32.totalorder %s61_s20, %s776_s1  ;;  %p782_p13 = scmp.lt.s32.totalorder %s776_s1, %s776_s1 }
  0x1f   :  { %p783_p0 = por %p782_p13, %p781_p12 }
  0x21   :  { %p784_p1 = pnand %p783_p0, %p777_p11 }
  0x23   :  { %787 = shalt.err (!%p784_p1)
}
  0x24   :  { %s889_s28 = smov 64   ;;  %s890_s9 = smov 4  }
  0x25   :  { %66 = dma.hbm_to_vmem [thread:$0]  %s1116_s4, 256, %s61_s20, [#allocation9], %s889_s28, %s889_s28, %s890_s9  }
  0x26   :  { %s788_s14 = scalar_lea.hbm %s1112_s0, 256 }
  0x27   :  { %p789_p2 = scmp.ne.s32.totalorder %s1112_s0, %s788_s14  ;;  %p792_p3 = scmp.lt.u32.totalorder %s788_s14, %s1112_s0 }
  0x29   :  { %p794_p4 = pnand %p792_p3, %p789_p2 }
  0x2b   :  { %797 = shalt.err (!%p794_p4)
}
  0x2c   :  { %s798_s23 = scalar_lea.vmem %s23_s22, 256  ;;  %p803_p6 = scmp.lt.s32.totalorder %s23_s22, %s23_s22 }
  0x2d   :  { %p799_p5 = scmp.ne.s32.totalorder %s23_s22, %s798_s23  ;;  %p804_p7 = scmp.lt.s32.totalorder %s798_s23, %s798_s23 }
  0x2f   :  { %p805_p8 = por %p804_p7, %p803_p6 }
  0x31   :  { %p806_p9 = pnand %p805_p8, %p799_p5 }
  0x33   :  { %809 = shalt.err (!%p806_p9)
}
  0x34   :  { %28 = dma.hbm_to_vmem [thread:$0]  %s1112_s0, 256, %s23_s22, [#allocation3], %s885_s15, %s885_s15, %s886_s16  }
  0x35   :  { %s891_s24 = smov [#allocation7]   ;;  %s892_s26 = smov [#allocation10]  }
  0x36   :  { %s46_s25 = sshll.u32 %s891_s24, 4  ;;  %s74_s27 = sshll.u32 %s892_s26, 4  ;;  %s47_s25 = int_to_ptr.vmem [resolvable:$true] %s46_s25  ;;  %s75_s27 = int_to_ptr.vmem [resolvable:$true] %s74_s27 }
  0x37   :  { %s810_s1 = scalar_lea.hbm %s1114_s2, 256 }
  0x38   :  { %p811_p10 = scmp.ne.s32.totalorder %s1114_s2, %s810_s1  ;;  %p814_p11 = scmp.lt.u32.totalorder %s810_s1, %s1114_s2 }
  0x3a   :  { %p816_p12 = pnand %p814_p11, %p811_p10 }
  0x3c   :  { %819 = shalt.err (!%p816_p12)
}
  0x3d   :  { %s820_s0 = scalar_lea.vmem %s47_s25, 256  ;;  %p825_p0 = scmp.lt.s32.totalorder %s47_s25, %s47_s25 }
  0x3e   :  { %p821_p13 = scmp.ne.s32.totalorder %s47_s25, %s820_s0  ;;  %p826_p1 = scmp.lt.s32.totalorder %s820_s0, %s820_s0 }
  0x40   :  { %p827_p2 = por %p826_p1, %p825_p0 }
  0x42   :  { %p828_p3 = pnand %p827_p2, %p821_p13 }
  0x44   :  { %831 = shalt.err (!%p828_p3)
}
  0x45   :  { %52 = dma.hbm_to_vmem [thread:$0]  %s1114_s2, 256, %s47_s25, [#allocation6], %s889_s28, %s889_s28, %s890_s9  }
  0x46   :  { %s832_s19 = scalar_lea.hbm %s1118_s6, 512 }
  0x47   :  { %p833_p4 = scmp.ne.s32.totalorder %s1118_s6, %s832_s19  ;;  %p836_p5 = scmp.lt.u32.totalorder %s832_s19, %s1118_s6 }
  0x49   :  { %p838_p6 = pnand %p836_p5, %p833_p4 }
  0x4b   :  { %841 = shalt.err (!%p838_p6)
}
  0x4c   :  { %s842_s24 = scalar_lea.vmem %s75_s27, 512  ;;  %p847_p8 = scmp.lt.s32.totalorder %s75_s27, %s75_s27 }
  0x4d   :  { %p843_p7 = scmp.ne.s32.totalorder %s75_s27, %s842_s24  ;;  %p848_p9 = scmp.lt.s32.totalorder %s842_s24, %s842_s24 }
  0x4f   :  { %p849_p10 = por %p848_p9, %p847_p8 }
  0x51   :  { %p850_p11 = pnand %p849_p10, %p843_p7 }
  0x53   :  { %853 = shalt.err (!%p850_p11)
}
  0x54   :  { %80 = dma.hbm_to_vmem [thread:$0]  %s1118_s6, 512, %s75_s27, [#allocation9], %s889_s28, %s889_s28, %s890_s9  }
  0x55   :  { %876 = dma.done.wait [#allocation3], 256  }
  0x56   :  { %877 = vsyncadd [#allocation3], 4294967040 }
  0x57   :  { %878 = dma.done.wait [#allocation6], 512  }
  0x58   :  { %879 = vsyncadd [#allocation6], 4294966784 }
  0x59   :  { %880 = dma.done.wait [#allocation9], 768  }
  0x5a   :  { %881 = vsyncadd [#allocation9], 4294966528  ;;  %v893_v0 = vmov 0.0   ;;  %vm894_vm0 = vmmov 0   ;;  %v720_v1 = vld [vmem:[#allocation7] sm:$0xff]   ;;  %v721_v2 = vld [vmem:[#allocation8] sm:$0xff]  }
  0x5b   :  { %649 = vmatprep.subr.bf16.mxu0 %v893_v0  ;;  %657 = vmatprep.subr.bf16.mxu1 %v893_v0  ;;  %v722_v3 = vld [vmem:[#allocation7 + $0x8] sm:$0xff]   ;;  %v723_v4 = vld [vmem:[#allocation8 + $0x8] sm:$0xff]   ;;  %v1026_v5 = vld [vmem:[#allocation2] sm:$0xff]  ;;  %vm128_vm1 = vcmask 261120   ;;  %s895_s9 = smov 32   ;;  %vm290_vm2 = vcmask 523264  }
  0x5c   :  { %653 = vmatprep.mubr.msk.bf16.mxu0 %vm894_vm0, %v893_v0  ;;  %661 = vmatprep.mubr.msk.bf16.mxu1 %vm894_vm0, %v893_v0  ;;  %v1028_v6 = vld [vmem:[#allocation2 + $0x8] sm:$0xff]  ;;  %v1030_v7 = vld [vmem:[#allocation5] sm:$0xff]  ;;  %v1034_v9 = vld [vmem:[#allocation5 + $0x8] sm:$0xff]  ;;  %vm437_vm3 = vcmask 64512   ;;  %vm490_vm4 = vcmask 1043456  }
  0x5d   :  { %650 = vmatpush3.bf16.msra.mxu0 %v720_v1  ;;  %658 = vmatpush3.bf16.msra.mxu1 %v721_v2  ;;  %v103_v8 = vpack.c.bf16 %v1028_v6, %v1026_v5  ;;  %v104_v10 = vpack.c.bf16 %v1034_v9, %v1030_v7  ;;  %v724_v11 = vld [vmem:[#allocation10] sm:$0xff]   ;;  %v725_v12 = vld [vmem:[#allocation10 + $0x8] sm:$0xff]   ;;  %v726_v13 = vld [vmem:[#allocation10 + $0x10] sm:$0xff]  }
  0x5e   :  { %651 = vmatprep.subr.bf16.mxu0 %v893_v0  ;;  %659 = vmatprep.subr.bf16.mxu1 %v893_v0  ;;  %v727_v14 = vld [vmem:[#allocation10 + $0x18] sm:$0xff]   ;;  %v616_v16 = vld [vmem:[%s1117_s5] ss:$0 sm:$0xff] }
  0x5f   :  { %v612_v27 = vld [vmem:[%s1115_s3] ss:$0 sm:$0xff]  ;;  %s896_s3 = smov 96  }
  0x60   :  { %v620_v36 = vld [vmem:[%s1119_s7] ss:$0 sm:$0xff]  ;;  %s897_s7 = smov [#allocation11]  }
  0x61   :  { %652 = vmatpush3.bf16.msra.mxu0 %v722_v3  ;;  %660 = vmatpush3.bf16.msra.mxu1 %v723_v4  ;;  %s598_s30 = sshll.u32 %s897_s7, 4  ;;  %s599_s30 = int_to_ptr.vmem [resolvable:$true] %s598_s30 }
  0x62   :  { %665 = vmatprep.subr.bf16.mxu0 %v893_v0  ;;  %677 = vmatprep.subr.bf16.mxu1 %v893_v0  ;;  %s854_s1 = scalar_lea.vmem %s599_s30, 256  ;;  %p859_p13 = scmp.lt.s32.totalorder %s599_s30, %s599_s30 }
  0x63   :  { %p855_p12 = scmp.ne.s32.totalorder %s599_s30, %s854_s1  ;;  %p860_p0 = scmp.lt.s32.totalorder %s854_s1, %s854_s1 }
  0x64   :  { %654 = vmatmul.mubr.msk.bf16.vlgmr.msra.gmra.mrb[0].mxu0 %vm128_vm1, %v103_v8  ;;  %662 = vmatmul.mubr.msk.bf16.vlgmr.msra.gmra.mrb[0].mxu1 %vm128_vm1, %v104_v10 }
  0x65   :  { %673 = vmatprep.mubr.msk.bf16.mxu0 %vm894_vm0, %v893_v0  ;;  %679 = vmatprep.mubr.msk.bf16.mxu1 %vm894_vm0, %v893_v0  ;;  %p861_p1 = por %p860_p0, %p859_p13 }
  0x66   :  { %666 = vmatpush3.bf16.msra.mxu0 %v724_v11 }
  0x67   :  { %667 = vmatprep.subr.bf16.mxu0 %v893_v0  ;;  %p862_p2 = pnand %p861_p1, %p855_p12 }
  0x6a   :  { %668 = vmatpush3.bf16.msra.mxu0 %v725_v12 }
  0x6b   :  { %669 = vmatprep.subr.bf16.mxu0 %v893_v0 }
  0x6e   :  { %670 = vmatpush3.bf16.msra.mxu0 %v726_v13 }
  0x6f   :  { %671 = vmatprep.subr.bf16.mxu0 %v893_v0 }
  0x72   :  { %672 = vmatpush3.bf16.msra.mxu0 %v727_v14 }
  0x73   :  { %689 = vmatprep.subr.bf16.mxu0 %v893_v0 }
 0x137   :  { %v166_v15 = vpop.f32.mrb[0].mxu0  ;;  %v233_v17 = vpop.f32.mrb[0].mxu1 }
 0x138   :  { %v655_v18 = vpop.f32.mrb[1].mxu0  ;;  %v663_v19 = vpop.f32.mrb[1].mxu1  ;;  %v234_v23 = vadd.f32 %v616_v16, %v233_v17  ;;  %v167_v29 = vadd.f32 %v612_v27, %v166_v15 }
 0x139   :  { %v169_v20 = vpop.f32.mrb[2].mxu0  ;;  %v236_v21 = vpop.f32.mrb[2].mxu1 }
 0x13a   :  { %v656_v22 = vpop.f32.mrb[3].mxu0  ;;  %v237_v24 = vadd.f32 %v616_v16, %v236_v21  ;;  %v664_v25 = vpop.f32.mrb[3].mxu1  ;;  %v170_v30 = vadd.f32 %v612_v27, %v169_v20  ;;  %v337_v46 = vpack.c.bf16 %v234_v23, %v167_v29 }
 0x13c   :  { %v715_v26 = vpack.i.bf16 %v237_v24, %v234_v23  ;;  %v338_v48 = vpack.c.bf16 %v237_v24, %v170_v30 }
 0x13e   :  { %716 = vrot.lane.b32.xlu0 %v715_v26, %s895_s9 }
 0x1b0   :  { %v717_v28 = vpop.permute.xlu0 %716 }
 0x1b1   :  { %v719_v31 = vunpack.i.h.bf16 %v717_v28  ;;  %v718_v32 = vunpack.i.l.bf16 %v717_v28 }
 0x1b3   :  { %v248_v33 = vsel %vm128_vm1, %v167_v29, %v718_v32  ;;  %v249_v34 = vsel %vm128_vm1, %v170_v30, %v719_v31 }
 0x1b4   :  { %v250_v35 = vpack.c.bf16 %v249_v34, %v248_v33 }
 0x1b6   :  { %674 = vmatmul.mubr.msk.bf16.vlgmr.msra.gmra.mrb[4].mxu0 %vm290_vm2, %v250_v35 }
 0x1b7   :  { %691 = vmatprep.mubr.msk.bf16.mxu0 %vm894_vm0, %v893_v0 }
 0x289   :  { %v328_v37 = vpop.f32.mrb[4].mxu0 }
 0x28a   :  { %v329_v38 = vadd.f32 %v620_v36, %v328_v37  ;;  %v675_v39 = vpop.f32.mrb[5].mxu0 }
 0x28b   :  { %v331_v40 = vpop.f32.mrb[6].mxu0 }
 0x28c   :  { %v1063_v41 = vpack.c.bf16 %v329_v38, %v329_v38  ;;  %v676_v42 = vpop.f32.mrb[7].mxu0  ;;  %v332_v44 = vadd.f32 %v620_v36, %v331_v40 }
 0x28e   :  { %v343_v43 = vsel %vm128_vm1, %v1063_v41, 0  ;;  %v336_v45 = vpack.c.bf16 %v332_v44, %v332_v44 }
 0x28f   :  { %678 = vmatpush3.bf16.xpose.msra.mxu1 %v343_v43 }
 0x290   :  { %683 = vmatprep.subr.bf16.mxu1 %v893_v0  ;;  %v390_v47 = vsel %vm128_vm1, %v336_v45, 0 }
 0x296   :  { %680 = vmatmul.mubr.msk.bf16.vlgmr.msra.gmra.mrb[4].mxu1 %vm128_vm1, %v337_v46 }
 0x297   :  { %684 = vmatpush3.bf16.xpose.msra.mxu1 %v390_v47  ;;  %685 = vmatprep.mubr.msk.bf16.mxu1 %vm894_vm0, %v893_v0 }
 0x298   :  { %695 = vmatprep.subr.bf16.mxu1 %v893_v0 }
 0x29e   :  { %686 = vmatmul.mubr.msk.bf16.vlgmr.msra.gmra.mrb[8].mxu1 %vm128_vm1, %v338_v48 }
 0x29f   :  { %697 = vmatprep.mubr.msk.bf16.mxu1 %vm894_vm0, %v893_v0 }
 0x369   :  { %v379_v49 = vpop.f32.mrb[4].mxu1 }
 0x36a   :  { %v433_v50 = vmul.f32 0.17677669, %v379_v49  ;;  %v681_v51 = vpop.f32.mrb[5].mxu1 }
 0x36b   :  { %v382_v52 = vpop.f32.mrb[6].mxu1 }
 0x36c   :  { %v434_v53 = vmul.f32 0.17677669, %v382_v52  ;;  %v682_v54 = vpop.f32.mrb[7].mxu1  ;;  %v438_v55 = vsel %vm437_vm3, %v433_v50, -inf }
 0x36d   :  { %439 = vmax.xlane.f32.xlu0 %v438_v55 }
 0x36e   :  { %v441_v56 = vsel %vm437_vm3, %v434_v53, -inf }
 0x36f   :  { %442 = vmax.xlane.f32.xlu1 %v441_v56 }
 0x371   :  { %v426_v57 = vpop.f32.mrb[8].mxu1 }
 0x372   :  { %v435_v58 = vmul.f32 0.17677669, %v426_v57  ;;  %v687_v59 = vpop.f32.mrb[9].mxu1 }
 0x373   :  { %v429_v60 = vpop.f32.mrb[10].mxu1 }
 0x374   :  { %v436_v61 = vmul.f32 0.17677669, %v429_v60  ;;  %v688_v62 = vpop.f32.mrb[11].mxu1  ;;  %v444_v63 = vsel %vm437_vm3, %v435_v58, -inf }
 0x375   :  { %445 = vmax.xlane.f32.xlu1 %v444_v63 }
 0x376   :  { %v447_v0 = vsel %vm437_vm3, %v436_v61, -inf }
 0x379   :  { %448 = vmax.xlane.f32.xlu1 %v447_v0 }
 0x383   :  { %536 = vrot.lane.b32.xlu0 %v336_v45, %s896_s3 }
 0x3fa   :  { %v440_v1 = vpop.xlane.xlu0 %439 }
 0x3fb   :  { %v450_v2 = vsub.f32 %v433_v50, %v440_v1 }
 0x3fc   :  { %v443_v3 = vpop.xlane.xlu1 %442 }
 0x3fd   :  { %v454_v4 = vmul.f32 1.442695, %v450_v2  ;;  %v451_v8 = vsub.f32 %v434_v53, %v443_v3 }
 0x3fe   :  { %v537_v10 = vpop.permute.xlu0 %536 }
 0x3ff   :  { %728 = vpow2.f32 %v454_v4  ;;  %v456_v11 = vmul.f32 1.442695, %v451_v8  ;;  %v542_v12 = vsel %vm490_vm4, %v537_v10, 0 }
 0x400   :  { %696 = vmatpush3.bf16.msra.mxu1 %v542_v12 }
 0x401   :  { %730 = vpow2.f32 %v456_v11 }
 0x402   :  { %v446_v13 = vpop.xlane.xlu1 %445 }
 0x403   :  { %v452_v14 = vsub.f32 %v435_v58, %v446_v13 }
 0x405   :  { %v458_v15 = vmul.f32 1.442695, %v452_v14 }
 0x406   :  { %v449_v16 = vpop.xlane.xlu1 %448 }
 0x407   :  { %732 = vpow2.f32 %v458_v15  ;;  %v453_v17 = vsub.f32 %v436_v61, %v449_v16 }
 0x409   :  { %v729_v18 = vpop.eup %728  ;;  %v460_v19 = vmul.f32 1.442695, %v453_v17 }
 0x40a   :  { %v462_v20 = vsel %vm437_vm3, %v729_v18, 0.0 }
 0x40b   :  { %v731_v21 = vpop.eup %730  ;;  %734 = vpow2.f32 %v460_v19  ;;  %463 = vadd.xlane.f32.xlu1 %v462_v20 }
 0x40c   :  { %v465_v22 = vsel %vm437_vm3, %v731_v21, 0.0 }
 0x40f   :  { %466 = vadd.xlane.f32.xlu1 %v465_v22 }
 0x411   :  { %v733_v23 = vpop.eup %732 }
 0x412   :  { %v468_v24 = vsel %vm437_vm3, %v733_v23, 0.0 }
 0x413   :  { %469 = vadd.xlane.f32.xlu1 %v468_v24 }
 0x415   :  { %v735_v25 = vpop.eup %734 }
 0x416   :  { %v471_v26 = vsel %vm437_vm3, %v735_v25, 0.0 }
 0x417   :  { %472 = vadd.xlane.f32.xlu1 %v471_v26 }
 0x428   :  { %485 = vrot.lane.b32.xlu1 %v1063_v41, %s896_s3 }
 0x498   :  { %v464_v27 = vpop.xlane.xlu1 %463 }
 0x499   :  { %736 = vrcp.f32 %v464_v27 }
 0x49c   :  { %v467_v28 = vpop.xlane.xlu1 %466 }
 0x49d   :  { %738 = vrcp.f32 %v467_v28 }
 0x4a0   :  { %v470_v29 = vpop.xlane.xlu1 %469 }
 0x4a1   :  { %740 = vrcp.f32 %v470_v29 }
 0x4a3   :  { %v737_v31 = vpop.eup %736 }
 0x4a4   :  { %v473_v30 = vpop.xlane.xlu1 %472  ;;  %v478_v33 = vmul.f32 %v737_v31, %v729_v18 }
 0x4a5   :  { %742 = vrcp.f32 %v473_v30 }
 0x4a7   :  { %v739_v32 = vpop.eup %738 }
 0x4a8   :  { %v479_v34 = vmul.f32 %v739_v32, %v731_v21  ;;  %v486_v35 = vpop.permute.xlu1 %485 }
 0x4a9   :  { %v492_v36 = vsel %vm490_vm4, %v486_v35, 0 }
 0x4aa   :  { %690 = vmatpush3.bf16.msra.mxu0 %v492_v36  ;;  %v482_v37 = vpack.c.bf16 %v479_v34, %v478_v33 }
 0x4ab   :  { %v741_v38 = vpop.eup %740 }
 0x4ac   :  { %v480_v40 = vmul.f32 %v741_v38, %v733_v23 }
 0x4ad   :  { %692 = vmatmul.mubr.msk.bf16.vlgmr.msra.gmra.mrb[8].mxu0 %vm437_vm3, %v482_v37 }
 0x4af   :  { %v743_v39 = vpop.eup %742 }
 0x4b0   :  { %v481_v41 = vmul.f32 %v743_v39, %v735_v25 }
 0x4b2   :  { %v483_v42 = vpack.c.bf16 %v481_v41, %v480_v40 }
 0x4b4   :  { %698 = vmatmul.mubr.msk.bf16.vlgmr.msra.gmra.mrb[12].mxu1 %vm437_vm3, %v483_v42 }
 0x580   :  { %v528_v43 = vpop.f32.mrb[8].mxu0 }
 0x581   :  { %v585_v44 = vadd.f32 %v528_v43, %v1026_v5  ;;  %v693_v45 = vpop.f32.mrb[9].mxu0 }
 0x582   :  { %v531_v46 = vpop.f32.mrb[10].mxu0 }
 0x583   :  { %v587_v47 = vadd.f32 %v585_v44, %v1030_v7  ;;  %v694_v48 = vpop.f32.mrb[11].mxu0 }
 0x585   :  { %v589_v49 = vadd.f32 %v587_v47, %v531_v46 }
 0x587   :  { %591 = vst.msk [vmem:[#allocation11] sm:$0xff] %vm128_vm1, %v589_v49  ;;  %v578_v50 = vpop.f32.mrb[12].mxu1 }
 0x588   :  { %v586_v51 = vadd.f32 %v578_v50, %v1028_v6  ;;  %v699_v52 = vpop.f32.mrb[13].mxu1 }
 0x589   :  { %v581_v53 = vpop.f32.mrb[14].mxu1 }
 0x58a   :  { %v588_v54 = vadd.f32 %v586_v51, %v1034_v9  ;;  %v700_v55 = vpop.f32.mrb[15].mxu1 }
 0x58c   :  { %v590_v56 = vadd.f32 %v588_v54, %v581_v53 }
 0x58e   :  { %592 = vst.msk [vmem:[#allocation11 + $0x8] sm:$0xff] %vm128_vm1, %v590_v56 }
 0x58f   :  { %865 = shalt.err (!%p862_p2)
}
 0x590   :  { %s866_s12 = scalar_lea.hbm %s1120_s8, 256 }
 0x591   :  { %p867_p3 = scmp.ne.s32.totalorder %s1120_s8, %s866_s12  ;;  %p870_p4 = scmp.lt.u32.totalorder %s866_s12, %s1120_s8 }
 0x593   :  { %p872_p5 = pnand %p870_p4, %p867_p3 }
 0x595   :  { %875 = shalt.err (!%p872_p5)
}
 0x596   :  { %604 = dma.vmem_to_hbm [thread:$0]  %s599_s30, 256, %s1120_s8, [#allocation4], %s885_s15, %s885_s15, %s886_s16  }
 0x597   :  { %882 = dma.done.wait [#allocation4], 256  }
 0x598   :  { %883 = vsyncadd [#allocation4], 4294967040 }
 0x599   :  { %608 = vsyncpa [#allocation3], 1 }
 0x59a   :  { %609 = vsyncpa [#allocation6], 1 }
 0x59b   :  { %610 = vsyncpa [#allocation9], 1 }
 0x59c   :  { %611 = vsyncpa [#allocation4], 1 }

</bundles_post_ra>
